<compile_context>
chip_gen: v5e
topology: v5e:2x2
jax: 0.10.0
libtpu: 0.0.40
codegen_flags: <defaults>
</compile_context>

<pallas_src>
import functools

import jax
import jax.numpy as jnp
from jax.experimental import pallas as pl
from jax.experimental.pallas import tpu as pltpu

BN_EPS = 1e-5
VMEM_LIMIT_BYTES = 48 * 1024 * 1024  # safe on v5e/v6e/v7x; actual usage is a few MiB


def _round_up(v, m):
    return ((v + m - 1) // m) * m


def _pick_tile_m(M, K, Cp, tile_m=None):
    """Pick an M tile that keeps the double-buffered working set small on every gen."""
    if tile_m is None:
        tile_m = 2048
        # x tile (bf16) + padded output tile (f32), x2 for double buffering, under ~8 MiB.
        while tile_m > 256 and 2 * tile_m * (2 * K + 4 * Cp) > (8 << 20):
            tile_m //= 2
    tile_m = _round_up(tile_m, 16)
    if M <= tile_m:
        tile_m = _round_up(max(M, 1), 16)
    return max(tile_m, 16)


# ---------------------------------------------------------------------------
# Pass 1: per-channel batch statistics (global over M), finalized to scale/shift.
# ---------------------------------------------------------------------------
def _stats_kernel(m_valid, tile_m, x_ref, w_ref, g_ref, b_ref, ss_ref, mean_sc, m2_sc):
    pid = pl.program_id(0)

    @pl.when(pid == 0)
    def _():
        mean_sc[...] = jnp.zeros_like(mean_sc)
        m2_sc[...] = jnp.zeros_like(m2_sc)

    # GEMM tile: (tile_m, K) @ (K, Cp) -> f32 (tile_m, Cp)
    y = jnp.dot(x_ref[...], w_ref[...], preferred_element_type=jnp.float32)

    # Mask rows that are zero-padding at the end of M (only the last tile is partial).
    row = pid * tile_m + jax.lax.broadcasted_iota(jnp.int32, (tile_m, 1), 0)
    valid = (row < m_valid).astype(jnp.float32)                    # (tile_m, 1)

    n_b = jnp.sum(valid, axis=0, keepdims=True)                    # (1, 1), >= 1
    tile_sum = jnp.sum(y * valid, axis=0, keepdims=True)           # (1, Cp)
    tile_mean = tile_sum / n_b
    centered = (y - tile_mean) * valid
    tile_m2 = jnp.sum(centered * centered, axis=0, keepdims=True)  # (1, Cp)

    # Chan's parallel combine (numerically stable, no E[y^2]-mean^2 cancellation).
    # Rows seen so far = pid * tile_m (only the last tile can be partial).
    n_a = jnp.full((1, 1), 1.0, jnp.float32) * (pid * tile_m).astype(jnp.float32)
    n_ab = n_a + n_b
    delta = tile_mean - mean_sc[...]
    mean_sc[...] = mean_sc[...] + delta * (n_b / n_ab)
    m2_sc[...] = m2_sc[...] + tile_m2 + (delta * delta) * (n_a * n_b / n_ab)

    @pl.when(pid == pl.num_programs(0) - 1)
    def _():
        mean = mean_sc[...]
        var = m2_sc[...] * (1.0 / float(m_valid))                  # biased variance (BN training)
        inv_std = jax.lax.rsqrt(var + BN_EPS)
        scale = inv_std * g_ref[...]
        shift = b_ref[...] - mean * scale
        ss_ref[0:1, :] = scale
        ss_ref[1:2, :] = shift


# ---------------------------------------------------------------------------
# Pass 2: recompute the cheap GEMM and apply the affine BN + ReLU.
# ---------------------------------------------------------------------------
def _apply_kernel(x_ref, w_ref, ss_ref, o_ref):
    y = jnp.dot(x_ref[...], w_ref[...], preferred_element_type=jnp.float32)
    scale = ss_ref[0:1, :]
    shift = ss_ref[1:2, :]
    o_ref[...] = jnp.maximum(y * scale + shift, 0.0).astype(o_ref.dtype)


def _fused_matmul_bn_relu(x2, w2, gamma, beta, tile_m=None):
    """x2: (M, K) f32, w2: (K, Cout) f32. Returns relu(batchnorm(x2 @ w2)) as (M, Cout) f32."""
    M, K = x2.shape
    Cout = w2.shape[1]
    Cp = _round_up(Cout, 128)                      # lane-dense compute & stores
    TM = _pick_tile_m(M, K, Cp, tile_m)
    Mpad = _round_up(M, TM)
    Mt = Mpad // TM

    # bf16 MXU inputs (halves HBM traffic on the dominant x stream); f32 accumulation in-kernel.
    x2p = jnp.pad(x2, ((0, Mpad - M), (0, 0))).astype(jnp.bfloat16)
    w2p = jnp.pad(w2, ((0, 0), (0, Cp - Cout))).astype(jnp.bfloat16)
    g2 = jnp.pad(gamma.astype(jnp.float32), (0, Cp - Cout)).reshape(1, Cp)
    b2 = jnp.pad(beta.astype(jnp.float32), (0, Cp - Cout)).reshape(1, Cp)

    cparams_stats = pltpu.CompilerParams(
        dimension_semantics=("arbitrary",), vmem_limit_bytes=VMEM_LIMIT_BYTES)
    cparams_apply = pltpu.CompilerParams(
        dimension_semantics=("parallel",), vmem_limit_bytes=VMEM_LIMIT_BYTES)

    # Pass 1: global per-channel (scale, shift).
    scale_shift = pl.pallas_call(
        functools.partial(_stats_kernel, M, TM),
        out_shape=jax.ShapeDtypeStruct((2, Cp), jnp.float32),
        grid_spec=pltpu.PrefetchScalarGridSpec(
            num_scalar_prefetch=0,
            grid=(Mt,),
            in_specs=[
                pl.BlockSpec((TM, K), lambda i: (i, 0)),
                pl.BlockSpec((K, Cp), lambda i: (0, 0)),
                pl.BlockSpec((1, Cp), lambda i: (0, 0)),
                pl.BlockSpec((1, Cp), lambda i: (0, 0)),
            ],
            out_specs=pl.BlockSpec((2, Cp), lambda i: (0, 0)),
            scratch_shapes=[
                pltpu.VMEM((1, Cp), jnp.float32),
                pltpu.VMEM((1, Cp), jnp.float32),
            ]),
        compiler_params=cparams_stats,
    )(x2p, w2p, g2, b2)

    # Pass 2: normalize + ReLU (lane-dense padded output).
    y2p = pl.pallas_call(
        _apply_kernel,
        out_shape=jax.ShapeDtypeStruct((Mpad, Cp), jnp.float32),
        grid_spec=pltpu.PrefetchScalarGridSpec(
            num_scalar_prefetch=0,
            grid=(Mt,),
            in_specs=[
                pl.BlockSpec((TM, K), lambda i: (i, 0)),
                pl.BlockSpec((K, Cp), lambda i: (0, 0)),
                pl.BlockSpec((2, Cp), lambda i: (0, 0)),
            ],
            out_specs=pl.BlockSpec((TM, Cp), lambda i: (i, 0))),
        compiler_params=cparams_apply,
    )(x2p, w2p, scale_shift)

    return y2p[:M, :Cout]


def _im2col(xp, kh, kw, sh, sw):
    # xp: (B, Cin, H, W) -> (B*Ho*Wo, Cin*kh*kw), row-major over (B, Ho, Wo)
    B, Cin, H, W = xp.shape
    Ho = (H - kh) // sh + 1
    Wo = (W - kw) // sw + 1
    cols = []
    for i in range(kh):
        for j in range(kw):
            patch = xp[:, :, i:i + sh * (Ho - 1) + 1:sh, j:j + sw * (Wo - 1) + 1:sw]
            cols.append(patch)                                  # (B, Cin, Ho, Wo)
    col = jnp.stack(cols, axis=2)                               # (B, Cin, kh*kw, Ho, Wo)
    col = col.reshape(B, Cin * kh * kw, Ho, Wo)
    col = col.transpose(0, 2, 3, 1).reshape(B * Ho * Wo, Cin * kh * kw)
    return col, Ho, Wo


def conv2d_block_forward(x, weight, bias, gamma, beta,
                         kernel_size=(1, 1), stride=(1, 1), tile_m=None):
    """x: (B, num_his, num_nodes, input_dims) f32.
    weight: (Cout, Cin, kh, kw); bias/gamma/beta: (Cout,).
    Returns (B, num_his_out, num_nodes_out, output_dims) f32.

    NOTE: `bias` is accepted but not applied — a per-channel conv bias followed by
    training-mode BatchNorm cancels exactly (BN subtracts the batch mean), so dropping
    it is mathematically a no-op.
    # TODO(synk): BatchNorm running_mean/running_var (momentum) updates are a training
    # side effect that does not affect this forward output; not materialized here.
    """
    del bias
    kh, kw = kernel_size
    sh, sw = stride
    B, T, N, Cin = x.shape
    Cout = weight.shape[0]

    if (kh, kw) == (1, 1) and (sh, sw) == (1, 1):
        # Fast path: 1x1 conv == channel matmul; both PyTorch permutes and the final
        # un-permute collapse to plain reshapes in this flat (B*T*N, C) view.
        x2 = x.reshape(B * T * N, Cin)
        w2 = weight.reshape(Cout, Cin).T                        # (Cin, Cout)
        y2 = _fused_matmul_bn_relu(x2, w2, gamma, beta, tile_m=tile_m)
        return y2.reshape(B, T, N, Cout)

    # General kh x kw path: im2col GEMM (NCHW with H = num_nodes, W = num_his).
    xp = jnp.transpose(x, (0, 3, 2, 1))                         # (B, Cin, N, T)
    x2, Ho, Wo = _im2col(xp, kh, kw, sh, sw)
    w2 = weight.reshape(Cout, Cin * kh * kw).T
    y2 = _fused_matmul_bn_relu(x2, w2, gamma, beta, tile_m=tile_m)
    y = y2.reshape(B, Ho, Wo, Cout).transpose(0, 2, 1, 3)       # -> (B, T_out, N_out, Cout)
    return y


def init_params(key, input_dims, output_dims, kernel_size):
    kh, kw = kernel_size
    fan_in = input_dims * kh * kw
    fan_out = output_dims * kh * kw
    bound = (6.0 / (fan_in + fan_out)) ** 0.5                    # xavier_uniform_
    weight = jax.random.uniform(
        key, (output_dims, input_dims, kh, kw), jnp.float32, minval=-bound, maxval=bound)
    bias = jnp.zeros((output_dims,), jnp.float32)                # zeros_ init
    gamma = jnp.ones((output_dims,), jnp.float32)                # BatchNorm weight
    beta = jnp.zeros((output_dims,), jnp.float32)                # BatchNorm bias
    return weight, bias, gamma, beta


def _reference(x, weight, bias, gamma, beta, stride):
    """Pure-JAX f32 reference of the PyTorch module forward (training-mode BN)."""
    xp = jnp.transpose(x, (0, 3, 2, 1))
    y = jax.lax.conv_general_dilated(
        xp, weight, window_strides=stride, padding="VALID",
        dimension_numbers=("NCHW", "OIHW", "NCHW"))
    y = y + bias.reshape(1, -1, 1, 1)
    mean = jnp.mean(y, axis=(0, 2, 3), keepdims=True)
    var = jnp.mean((y - mean) ** 2, axis=(0, 2, 3), keepdims=True)
    y = (y - mean) * jax.lax.rsqrt(var + BN_EPS)
    y = y * gamma.reshape(1, -1, 1, 1) + beta.reshape(1, -1, 1, 1)
    y = jnp.maximum(y, 0.0)
    return jnp.transpose(y, (0, 3, 2, 1))


if __name__ == "__main__":
    # Shapes implied by the module: (batch, num_his, num_nodes, input_dims)
    B, T, N, Cin, Cout = 2, 8, 16, 4, 8
    kernel_size = (1, 1)   # canonical GMAN usage
    stride = (1, 1)

    key = jax.random.PRNGKey(0)
    k_x, k_w = jax.random.split(key)
    x = jax.random.normal(k_x, (B, T, N, Cin), jnp.float32)
    weight, bias, gamma, beta = init_params(k_w, Cin, Cout, kernel_size)

    # tile_m=80 deliberately does not divide M=256 so the demo exercises the multi-tile
    # grid, the Chan stats combine, and the padded-row masking on tiny shapes.
    out = conv2d_block_forward(x, weight, bias, gamma, beta, kernel_size, stride, tile_m=80)
    out = jax.block_until_ready(out)
    assert out.shape == (B, T, N, Cout), out.shape
    assert bool(jnp.all(jnp.isfinite(out))), "non-finite output"

    ref = _reference(x, weight, bias, gamma, beta, stride)
    max_err = float(jnp.max(jnp.abs(out - ref)))
    assert max_err < 5e-2, f"mismatch vs reference: {max_err}"

    print("KERNEL_OK")
</pallas_src>

<mosaic_0001>
module attributes {stable_mosaic.version = 11 : i64} {
  func.func @_stats_kernel(%arg0: i32, %arg1: memref<80x4xbf16, #tpu.memory_space<vmem>>, %arg2: memref<4x128xbf16, #tpu.memory_space<vmem>>, %arg3: memref<1x128xf32, #tpu.memory_space<vmem>>, %arg4: memref<1x128xf32, #tpu.memory_space<vmem>>, %arg5: memref<2x128xf32, #tpu.memory_space<vmem>>, %arg6: memref<1x128xf32, #tpu.memory_space<vmem>>, %arg7: memref<1x128xf32, #tpu.memory_space<vmem>>) attributes {dimension_semantics = [#tpu.dimension_semantics<arbitrary>], iteration_bounds = array<i64: 4>, scalar_prefetch = 0 : i64, scratch_operands = 2 : i64, tpu.core_type = #tpu.core_type<tc>, window_params = [{transform_indices = @transform_0, window_bounds = array<i64: 80, 4>}, {pipeline_mode = #tpu.pipeline_mode<synchronous>, transform_indices = @transform_1, window_bounds = array<i64: 4, 128>}, {pipeline_mode = #tpu.pipeline_mode<synchronous>, transform_indices = @transform_2, window_bounds = array<i64: 1, 128>}, {pipeline_mode = #tpu.pipeline_mode<synchronous>, transform_indices = @transform_3, window_bounds = array<i64: 1, 128>}, {pipeline_mode = #tpu.pipeline_mode<synchronous>, transform_indices = @transform_4, window_bounds = array<i64: 2, 128>}]} {
    %c0_i32 = arith.constant 0 : i32
    %0 = arith.cmpi eq, %arg0, %c0_i32 : i32
    %1 = arith.extui %0 : i1 to i32
    %c0_i32_0 = arith.constant 0 : i32
    %2 = arith.cmpi ne, %1, %c0_i32_0 : i32
    scf.if %2 {
      %cst_20 = arith.constant 0.000000e+00 : f32
      %55 = vector.broadcast %cst_20 : f32 to vector<1x128xf32>
      %c0_21 = arith.constant 0 : index
      %c0_22 = arith.constant 0 : index
      %56 = vector.load %arg6[%c0_21, %c0_22] : memref<1x128xf32, #tpu.memory_space<vmem>>, vector<1x128xf32>
      tpu.vector_store %arg6[%c0_21, %c0_22], %55 {strides = array<i32>} : memref<1x128xf32, #tpu.memory_space<vmem>>, vector<1x128xf32>,
      %cst_23 = arith.constant 0.000000e+00 : f32
      %57 = vector.broadcast %cst_23 : f32 to vector<1x128xf32>
      %c0_24 = arith.constant 0 : index
      %c0_25 = arith.constant 0 : index
      %58 = vector.load %arg7[%c0_24, %c0_25] : memref<1x128xf32, #tpu.memory_space<vmem>>, vector<1x128xf32>
      tpu.vector_store %arg7[%c0_24, %c0_25], %57 {strides = array<i32>} : memref<1x128xf32, #tpu.memory_space<vmem>>, vector<1x128xf32>,
    } else {
    }
    %c0 = arith.constant 0 : index
    %c0_1 = arith.constant 0 : index
    %3 = vector.load %arg1[%c0, %c0_1] : memref<80x4xbf16, #tpu.memory_space<vmem>>, vector<80x4xbf16>
    %c0_2 = arith.constant 0 : index
    %c0_3 = arith.constant 0 : index
    %4 = vector.load %arg2[%c0_2, %c0_3] : memref<4x128xbf16, #tpu.memory_space<vmem>>, vector<4x128xbf16>
    %cst = arith.constant dense<0.000000e+00> : vector<80x128xf32>
    %5 = tpu.matmul %3, %4, %cst {dimension_numbers = #tpu.dot_dimension_numbers<[1], [0], [0], [1], [0, 0, 1, 1], [], []>} : vector<80x4xbf16>, vector<4x128xbf16>, vector<80x128xf32> -> vector<80x128xf32>
    %c80_i32 = arith.constant 80 : i32
    %6 = arith.muli %arg0, %c80_i32 : i32
    %7 = tpu.iota {dimensions = array<i32: 0>} : vector<80x1xi32>
    %8 = vector.broadcast %6 : i32 to vector<80x1xi32>
    %9 = arith.addi %8, %7 : vector<80x1xi32>
    %c256_i32 = arith.constant 256 : i32
    %10 = vector.broadcast %c256_i32 : i32 to vector<80x1xi32>
    %11 = arith.cmpi slt, %9, %10 : vector<80x1xi32>
    %12 = arith.extui %11 : vector<80x1xi1> to vector<80x1xi32>
    %13 = arith.sitofp %12 : vector<80x1xi32> to vector<80x1xf32>
    %cst_4 = arith.constant dense<0.000000e+00> : vector<1xf32>
    %14 = vector.multi_reduction <add>, %13, %cst_4 [0] : vector<80x1xf32> to vector<1xf32>
    %15 = vector.shape_cast %14 : vector<1xf32> to vector<1x1xf32>
    %16 = vector.broadcast %13 : vector<80x1xf32> to vector<80x128xf32>
    %17 = arith.mulf %5, %16 : vector<80x128xf32>
    %cst_5 = arith.constant dense<0.000000e+00> : vector<128xf32>
    %18 = vector.multi_reduction <add>, %17, %cst_5 [0] : vector<80x128xf32> to vector<128xf32>
    %19 = vector.shape_cast %18 : vector<128xf32> to vector<1x128xf32>
    %20 = vector.broadcast %15 : vector<1x1xf32> to vector<1x128xf32>
    %21 = arith.divf %19, %20 : vector<1x128xf32>
    %22 = vector.broadcast %21 : vector<1x128xf32> to vector<80x128xf32>
    %23 = arith.subf %5, %22 : vector<80x128xf32>
    %24 = vector.broadcast %13 : vector<80x1xf32> to vector<80x128xf32>
    %25 = arith.mulf %23, %24 : vector<80x128xf32>
    %26 = arith.mulf %25, %25 : vector<80x128xf32>
    %cst_6 = arith.constant dense<0.000000e+00> : vector<128xf32>
    %27 = vector.multi_reduction <add>, %26, %cst_6 [0] : vector<80x128xf32> to vector<128xf32>
    %28 = vector.shape_cast %27 : vector<128xf32> to vector<1x128xf32>
    %cst_7 = arith.constant 1.000000e+00 : f32
    %29 = vector.broadcast %cst_7 : f32 to vector<1x1xf32>
    %c80_i32_8 = arith.constant 80 : i32
    %30 = arith.muli %arg0, %c80_i32_8 : i32
    %31 = arith.sitofp %30 : i32 to f32
    %32 = vector.broadcast %31 : f32 to vector<1x1xf32>
    %33 = arith.mulf %29, %32 : vector<1x1xf32>
    %34 = arith.addf %33, %15 : vector<1x1xf32>
    %c0_9 = arith.constant 0 : index
    %c0_10 = arith.constant 0 : index
    %35 = vector.load %arg6[%c0_9, %c0_10] : memref<1x128xf32, #tpu.memory_space<vmem>>, vector<1x128xf32>
    %36 = arith.subf %21, %35 : vector<1x128xf32>
    %c0_11 = arith.constant 0 : index
    %c0_12 = arith.constant 0 : index
    %37 = vector.load %arg6[%c0_11, %c0_12] : memref<1x128xf32, #tpu.memory_space<vmem>>, vector<1x128xf32>
    %38 = arith.divf %15, %34 : vector<1x1xf32>
    %39 = vector.broadcast %38 : vector<1x1xf32> to vector<1x128xf32>
    %40 = arith.mulf %36, %39 : vector<1x128xf32>
    %41 = arith.addf %37, %40 : vector<1x128xf32>
    %c0_13 = arith.constant 0 : index
    %c0_14 = arith.constant 0 : index
    %42 = vector.load %arg6[%c0_13, %c0_14] : memref<1x128xf32, #tpu.memory_space<vmem>>, vector<1x128xf32>
    tpu.vector_store %arg6[%c0_13, %c0_14], %41 {strides = array<i32>} : memref<1x128xf32, #tpu.memory_space<vmem>>, vector<1x128xf32>,
    %c0_15 = arith.constant 0 : index
    %c0_16 = arith.constant 0 : index
    %43 = vector.load %arg7[%c0_15, %c0_16] : memref<1x128xf32, #tpu.memory_space<vmem>>, vector<1x128xf32>
    %44 = arith.addf %43, %28 : vector<1x128xf32>
    %45 = arith.mulf %36, %36 : vector<1x128xf32>
    %46 = arith.mulf %33, %15 : vector<1x1xf32>
    %47 = arith.divf %46, %34 : vector<1x1xf32>
    %48 = vector.broadcast %47 : vector<1x1xf32> to vector<1x128xf32>
    %49 = arith.mulf %45, %48 : vector<1x128xf32>
    %50 = arith.addf %44, %49 : vector<1x128xf32>
    %c0_17 = arith.constant 0 : index
    %c0_18 = arith.constant 0 : index
    %51 = vector.load %arg7[%c0_17, %c0_18] : memref<1x128xf32, #tpu.memory_space<vmem>>, vector<1x128xf32>
    tpu.vector_store %arg7[%c0_17, %c0_18], %50 {strides = array<i32>} : memref<1x128xf32, #tpu.memory_space<vmem>>, vector<1x128xf32>,
    %c3_i32 = arith.constant 3 : i32
    %52 = arith.cmpi eq, %arg0, %c3_i32 : i32
    %53 = arith.extui %52 : i1 to i32
    %c0_i32_19 = arith.constant 0 : i32
    %54 = arith.cmpi ne, %53, %c0_i32_19 : i32
    scf.if %54 {
      %c0_20 = arith.constant 0 : index
      %c0_21 = arith.constant 0 : index
      %55 = vector.load %arg6[%c0_20, %c0_21] : memref<1x128xf32, #tpu.memory_space<vmem>>, vector<1x128xf32>
      %c0_22 = arith.constant 0 : index
      %c0_23 = arith.constant 0 : index
      %56 = vector.load %arg7[%c0_22, %c0_23] : memref<1x128xf32, #tpu.memory_space<vmem>>, vector<1x128xf32>
      %cst_24 = arith.constant 3.906250e-03 : f32
      %57 = vector.broadcast %cst_24 : f32 to vector<1x128xf32>
      %58 = arith.mulf %56, %57 : vector<1x128xf32>
      %cst_25 = arith.constant 9.99999974E-6 : f32
      %59 = vector.broadcast %cst_25 : f32 to vector<1x128xf32>
      %60 = arith.addf %58, %59 : vector<1x128xf32>
      %61 = math.rsqrt %60 : vector<1x128xf32>
      %c0_26 = arith.constant 0 : index
      %c0_27 = arith.constant 0 : index
      %62 = vector.load %arg3[%c0_26, %c0_27] : memref<1x128xf32, #tpu.memory_space<vmem>>, vector<1x128xf32>
      %63 = arith.mulf %61, %62 : vector<1x128xf32>
      %c0_28 = arith.constant 0 : index
      %c0_29 = arith.constant 0 : index
      %64 = vector.load %arg4[%c0_28, %c0_29] : memref<1x128xf32, #tpu.memory_space<vmem>>, vector<1x128xf32>
      %65 = arith.mulf %55, %63 : vector<1x128xf32>
      %66 = arith.subf %64, %65 : vector<1x128xf32>
      %c0_30 = arith.constant 0 : index
      %c0_31 = arith.constant 0 : index
      %67 = vector.load %arg5[%c0_30, %c0_31] : memref<2x128xf32, #tpu.memory_space<vmem>>, vector<1x128xf32>
      tpu.vector_store %arg5[%c0_30, %c0_31], %63 {strides = array<i32>} : memref<2x128xf32, #tpu.memory_space<vmem>>, vector<1x128xf32>,
      %c1 = arith.constant 1 : index
      %c0_32 = arith.constant 0 : index
      %68 = vector.load %arg5[%c1, %c0_32] : memref<2x128xf32, #tpu.memory_space<vmem>>, vector<1x128xf32>
      tpu.vector_store %arg5[%c1, %c0_32], %66 {strides = array<i32>} : memref<2x128xf32, #tpu.memory_space<vmem>>, vector<1x128xf32>,
    } else {
    }
    return
  }
  func.func @transform_0(%arg0: i32) -> (i32, i32) {
    %c0_i32 = arith.constant 0 : i32
    %c0_i32_0 = arith.constant 0 : i32
    return %arg0, %c0_i32 : i32, i32
  }
  func.func @transform_1(%arg0: i32) -> (i32, i32) {
    %c0_i32 = arith.constant 0 : i32
    %c0_i32_0 = arith.constant 0 : i32
    %c0_i32_1 = arith.constant 0 : i32
    return %c0_i32, %c0_i32_0 : i32, i32
  }
  func.func @transform_2(%arg0: i32) -> (i32, i32) {
    %c0_i32 = arith.constant 0 : i32
    %c0_i32_0 = arith.constant 0 : i32
    %c0_i32_1 = arith.constant 0 : i32
    return %c0_i32, %c0_i32_0 : i32, i32
  }
  func.func @transform_3(%arg0: i32) -> (i32, i32) {
    %c0_i32 = arith.constant 0 : i32
    %c0_i32_0 = arith.constant 0 : i32
    %c0_i32_1 = arith.constant 0 : i32
    return %c0_i32, %c0_i32_0 : i32, i32
  }
  func.func @transform_4(%arg0: i32) -> (i32, i32) {
    %c0_i32 = arith.constant 0 : i32
    %c0_i32_0 = arith.constant 0 : i32
    %c0_i32_1 = arith.constant 0 : i32
    return %c0_i32, %c0_i32_0 : i32, i32
  }
}

</mosaic_0001>

<bundles_post_ra>
// kernel: tpu_custom_call.1
= control target key start
LH: loop header
LB: loop body
LE: loop exit
PB: predicated region body
PF: predicated region fallthrough
CT: control target
= control target key end

     0   :  { %9 = vsyncpa [#allocation5], 0  ;;  %s685_s15 = smov 0   ;;  %s829_s0 = inlined_call_operand.vmem [shape: bf16[320,4], index: 0, kind: input, shape index: {}]   ;;  %s830_s1 = inlined_call_operand.vmem [shape: bf16[4,128], index: 1, kind: input, shape index: {}]   ;;  %s831_s2 = inlined_call_operand.vmem [shape: f32[1,128], index: 2, kind: input, shape index: {}]   ;;  %s832_s3 = inlined_call_operand.vmem [shape: f32[1,128], index: 3, kind: input, shape index: {}]   ;;  %s833_s4 = inlined_call_operand.hbm [shape: f32[2,128], index: 4, kind: output, shape index: {}]  }
   0x1 LB: > { %s691_s16 = sadd.s32 4294967295, %s655_s15   ;;  %p543_p0 = scmp.ge.s32.totalorder %s655_s15, 1  ;;  %s655_s15 = sphi %s685_s15, %s15_s15  }
   0x2   : > { %p159_p1 = scmp.lt.s32.totalorder %s655_s15, 5 }
   0x4   : > { %p160_p2 = pnand %p543_p0, %p159_p1 }
   0x5   : > { %s180_s17 = smul.u32 (!%p160_p2), 10, %s691_s16  ;;  %p545_p4 = scmp.ne.s32.totalorder (!%p160_p2), %s691_s16, 0 }
   0x6   : > { %163 = sbr.rel (%p160_p2) target bundleno = 284 (0x11c), region = 36 }
   0x7   : > { %p181_p3 = scmp.lt.s32.totalorder (!%p160_p2), %s180_s17, 39 }
   0xb   : > { %s835_s17 = smov (!%p181_p3, %s180_s17), 39  ;;  %190 = sbr.rel (%p545_p4) target bundleno = 19 (0x13), region = 40 }
   0xc   : > { %s544_s18 = sshll.u32 %s835_s17, 2 }
   0xd   : > { %s184_s21 = scalar_lea.vmem %s829_s0, %s544_s18 }
  0x10   : > { %v657_v0 = vmov 0.0  }
  0x11   : > { %191 = vst [vmem:[#allocation2] sm:$0x1] %v657_v0 }
  0x12   : > { %192 = vst [vmem:[#allocation3] sm:$0x1] %v657_v0 }
  0x13 PF: > { %v203_v1 = vld [vmem:[%s830_s1] sm:$0x3]  ;;  %vm245_vm0 = vcmask 1041408   ;;  %v588_v4 = vld [vmem:[%s184_s21 + $0x10] sm:$0xff]  ;;  %vm229_vm1 = vcmask 31744   ;;  %v587_v5 = vld [vmem:[%s184_s21 + $0x8] sm:$0xff]  ;;  %v284_v8 = vlaneseq }
  0x14   : > { %v247_v2 = vsel %vm245_vm0, %v203_v1, 0  ;;  %v586_v3 = vld [vmem:[%s184_s21] sm:$0xff]  ;;  %v589_v7 = vld [vmem:[%s184_s21 + $0x18] sm:$0xff]  ;;  %s283_s24 = smul.u32 80, %s691_s16  ;;  %v658_v18 = vmov 0.0   ;;  %p581_p5 = scmp.ne.s32.totalorder %s691_s16, 3 }
  0x15   : > { %256 = vmatpush.bf16.msra.mxu0 %v247_v2  ;;  %592 = vmatpush.bf16.msra.mxu2 %v247_v2  ;;  %v590_v6 = vld [vmem:[%s184_s21 + $0x20] sm:$0xff]  ;;  %v285_v9 = vshrl.u32 %v284_v8, 7 }
  0x16   : > { %591 = vmatpush.bf16.msra.mxu1 %v247_v2  ;;  %593 = vmatpush.bf16.msra.mxu3 %v247_v2  ;;  %v295_v11 = vstv %s283_s24  ;;  %s758_s25 = scvt.s32.f32 %s283_s24 }
  0x17   : > { %v286_v10 = vadd.s32 8, %v285_v9  ;;  %v296_v12 = vadd.s32 %v295_v11, %v285_v9  ;;  %v287_v13 = vadd.s32 16, %v285_v9  ;;  %v289_v15 = vadd.s32 32, %v285_v9 }
  0x18   : > { %566 = vmatmul.msk.bf16.vlgmr.msra.gmra.mxu0 %vm229_vm1, %v586_v3  ;;  %568 = vmatmul.msk.bf16.vlgmr.msra.gmra.mxu2 %vm229_vm1, %v588_v4  ;;  %v288_v17 = vadd.s32 24, %v285_v9  ;;  %v290_v26 = vadd.s32 40, %v285_v9  ;;  %v291_v30 = vadd.s32 48, %v285_v9  ;;  %v292_v34 = vadd.s32 56, %v285_v9 }
  0x19   : > { %567 = vmatmul.msk.bf16.vlgmr.msra.gmra.mxu1 %vm229_vm1, %v587_v5  ;;  %570 = vmatmul.msk.bf16.vlgmr.msra.gmra.mxu3 %vm229_vm1, %v590_v6  ;;  %v297_v14 = vadd.s32 %v295_v11, %v286_v10  ;;  %vm306_vm2 = vcmp.lt.s32.totalorder %v296_v12, 256  ;;  %v298_v16 = vadd.s32 %v295_v11, %v287_v13  ;;  %v300_v20 = vadd.s32 %v295_v11, %v289_v15 }
  0x1a   : > { %v706_v19 = vsel %vm306_vm2, 1.0, %v658_v18  ;;  %v299_v23 = vadd.s32 %v295_v11, %v288_v17  ;;  %v301_v29 = vadd.s32 %v295_v11, %v290_v26  ;;  %v302_v33 = vadd.s32 %v295_v11, %v291_v30 }
  0x1b   : > { %vm307_vm3 = vcmp.lt.s32.totalorder %v297_v14, 256  ;;  %vm308_vm4 = vcmp.lt.s32.totalorder %v298_v16, 256  ;;  %vm310_vm5 = vcmp.lt.s32.totalorder %v300_v20, 256  ;;  %v293_v37 = vadd.s32 64, %v285_v9 }
  0x1c   : > { %v708_v21 = vsel %vm307_vm3, 1.0, %v658_v18  ;;  %v712_v24 = vsel %vm308_vm4, 1.0, %v658_v18  ;;  %vm309_vm6 = vcmp.lt.s32.totalorder %v299_v23, 256  ;;  %v718_v31 = vsel %vm310_vm5, 1.0, %v658_v18 }
  0x1d   : > { %v336_v22 = vadd.f32 %v708_v21, %v706_v19  ;;  %v715_v27 = vsel %vm309_vm6, 1.0, %v658_v18  ;;  %vm311_vm7 = vcmp.lt.s32.totalorder %v301_v29, 256  ;;  %vm312_vm8 = vcmp.lt.s32.totalorder %v302_v33, 256 }
  0x1e   : > { %v721_v35 = vsel %vm311_vm7, 1.0, %v658_v18  ;;  %v303_v38 = vadd.s32 %v295_v11, %v292_v34  ;;  %v724_v39 = vsel %vm312_vm8, 1.0, %v658_v18  ;;  %v304_v40 = vadd.s32 %v295_v11, %v293_v37 }
  0x1f   : > { %v337_v25 = vadd.f32 %v712_v24, %v336_v22  ;;  %v294_v42 = vadd.s32 72, %v285_v9  ;;  %v437_v4 = vstv %s758_s25 }
  0x20   : > { %vm313_vm9 = vcmp.lt.s32.totalorder %v303_v38, 256  ;;  %vm314_vm10 = vcmp.lt.s32.totalorder %v304_v40, 256 }
  0x21   : > { %v338_v28 = vadd.f32 %v715_v27, %v337_v25  ;;  %v727_v43 = vsel %vm313_vm9, 1.0, %v658_v18  ;;  %v305_v44 = vadd.s32 %v295_v11, %v294_v42  ;;  %v730_v46 = vsel %vm314_vm10, 1.0, %v658_v18 }
  0x23   : > { %v339_v32 = vadd.f32 %v718_v31, %v338_v28  ;;  %vm315_vm11 = vcmp.lt.s32.totalorder %v305_v44, 256 }
  0x24   : > { %v733_v48 = vsel %vm315_vm11, 1.0, %v658_v18 }
  0x25   : > { %v340_v36 = vadd.f32 %v721_v35, %v339_v32 }
  0x27   : > { %v341_v41 = vadd.f32 %v724_v39, %v340_v36 }
  0x28   : > { %569 = vmatmul.msk.bf16.gmra.mxu2 %vm229_vm1, %v589_v7 }
  0x29   : > { %v342_v45 = vadd.f32 %v727_v43, %v341_v41 }
  0x2b   : > { %v343_v47 = vadd.f32 %v730_v46, %v342_v45 }
  0x2d   : > { %v344_v49 = vadd.f32 %v733_v48, %v343_v47 }
  0x2f   : > { %v345_v50 = vrot.slane %v344_v49, 4 }
  0x31   : > { %v346_v51 = vadd.f32 %v345_v50, %v344_v49 }
  0x33   : > { %v347_v53 = vrot.slane %v346_v51, 2 }
  0x35   : > { %v348_v56 = vadd.f32 %v347_v53, %v346_v51 }
  0x37   : > { %v349_v60 = vrot.slane %v348_v56, 1 }
  0x39   : > { %v754_v1 = vadd.f32 %v349_v60, %v348_v56 }
  0x3b   : > { %611 = vrcp.f32 %v754_v1  ;;  %v438_v8 = vadd.f32 %v437_v4, %v754_v1  ;;  %vm381_vm12 = vweird.f32 %v754_v1  ;;  %v387_v38 = vand.u32 2147483648, %v754_v1 }
  0x3c   : > { %v385_v41 = vand.u32 2147483647, %v754_v1 }
  0x3d   : > { %613 = vrcp.f32 %v438_v8  ;;  %v388_v47 = vor.u32 1.1754944e-38, %v387_v38  ;;  %vm446_vm0 = vweird.f32 %v438_v8  ;;  %v452_v50 = vand.u32 2147483648, %v438_v8 }
  0x3e   : > { %vm386_vm15 = vcmp.eq.f32.partialorder %v385_v41, 8.507059e+37  ;;  %v450_v56 = vand.u32 2147483647, %v438_v8 }
  0x3f   : > { %v453_v60 = vor.u32 1.1754944e-38, %v452_v50 }
  0x40   : > { %vm451_vm3 = vcmp.eq.f32.partialorder %v450_v56, 8.507059e+37 }
  0x41   : > { %v612_v10 = vpop.eup %611 }
  0x42   : > { %v377_v14 = vmul.f32 %v612_v10, %v754_v1  ;;  %vm382_vm13 = vweird.f32 %v612_v10 }
  0x43   : > { %v614_v20 = vpop.eup %613  ;;  %vm383_vm14 = vmor %vm381_vm12, %vm382_vm13 }
  0x44   : > { %v378_v23 = vsub.f32 1.0, %v377_v14  ;;  %v442_v30 = vmul.f32 %v614_v20, %v438_v8  ;;  %vm447_vm1 = vweird.f32 %v614_v20  ;;  %v439_v14 = vld [vmem:[#allocation2] sm:$0x1] }
  0x45   : > { %vm448_vm2 = vmor %vm446_vm0, %vm447_vm1 }
  0x46   : > { %v379_v32 = vmul.f32 %v612_v10, %v378_v23  ;;  %v443_v36 = vsub.f32 1.0, %v442_v30 }
  0x48   : > { %v380_v37 = vadd.f32 %v612_v10, %v379_v32  ;;  %v444_v44 = vmul.f32 %v614_v20, %v443_v36 }
  0x4a   : > { %v384_v45 = vsel %vm383_vm14, %v612_v10, %v380_v37  ;;  %v445_v53 = vadd.f32 %v614_v20, %v444_v44 }
  0x95   : > { %v736_v52 = vpop.f32.mrf.mxu0 }
  0x96   : > { %v738_v54 = vpop.f32.mrf.mxu1  ;;  %v351_v58 = vmul.f32 %v706_v19, %v736_v52 }
  0x97   : > { %v353_v61 = vmul.f32 %v712_v24, %v738_v54 }
  0x9b   : > { %v740_v55 = vpop.f32.mrf.mxu2 }
  0x9c   : > { %v764_v6 = vpop.f32.mrf.mxu3  ;;  %v355_v9 = vmul.f32 %v718_v31, %v740_v55 }
  0x9d   : > { %v742_v57 = vpop.f32.mrf.mxu0  ;;  %v359_v25 = vmul.f32 %v730_v46, %v764_v6 }
  0x9e   : > { %v352_v59 = vmul.f32 %v708_v21, %v742_v57  ;;  %v750_v63 = vpop.f32.mrf.mxu1 }
  0x9f   : > { %v354_v2 = vmul.f32 %v715_v27, %v750_v63 }
  0xa0   : > { %v361_v62 = vadd.f32 %v352_v59, %v351_v58  ;;  %v389_v58 = vsel %vm386_vm15, %v388_v47, %v384_v45  ;;  %v462_v45 = vmul.f32 %v437_v4, %v754_v1 }
  0xa2   : > { %v362_v3 = vadd.f32 %v361_v62, %v353_v61  ;;  %v449_v62 = vsel %vm448_vm2, %v614_v20, %v445_v53 }
  0xa3   : > { %v752_v0 = vpop.f32.mrf.mxu2  ;;  %v454_v10 = vsel %vm451_vm3, %v453_v60, %v449_v62 }
  0xa4   : > { %v363_v5 = vadd.f32 %v362_v3, %v354_v2  ;;  %v356_v12 = vmul.f32 %v721_v35, %v752_v0  ;;  %v782_v22 = vpop.f32.mrf.mxu3  ;;  %v463_v50 = vmul.f32 %v462_v45, %v454_v10 }
  0xa5   : > { %v360_v28 = vmul.f32 %v733_v48, %v782_v22 }
  0xa6   : > { %v364_v11 = vadd.f32 %v363_v5, %v355_v9 }
  0xa8   : > { %v365_v15 = vadd.f32 %v364_v11, %v356_v12 }
  0xab   : > { %v766_v7 = vpop.f32.mrf.mxu2 }
  0xac   : > { %v357_v13 = vmul.f32 %v724_v39, %v766_v7 }
  0xae   : > { %v366_v17 = vadd.f32 %v365_v15, %v357_v13  ;;  %v455_v15 = vmul.f32 %v454_v10, %v754_v1 }
  0xb3   : > { %v778_v16 = vpop.f32.mrf.mxu2 }
  0xb4   : > { %v358_v18 = vmul.f32 %v727_v43, %v778_v16 }
  0xb6   : > { %v367_v26 = vadd.f32 %v366_v17, %v358_v18 }
  0xb8   : > { %v368_v29 = vadd.f32 %v367_v26, %v359_v25 }
  0xba   : > { %v369_v33 = vadd.f32 %v368_v29, %v360_v28 }
  0xbc   : > { %v370_v34 = vrot.slane %v369_v33, 4 }
  0xbe   : > { %v371_v40 = vadd.f32 %v370_v34, %v369_v33 }
  0xc0   : > { %v372_v42 = vrot.slane %v371_v40, 2 }
  0xc2   : > { %v373_v49 = vadd.f32 %v372_v42, %v371_v40 }
  0xc4   : > { %v374_v51 = vrot.slane %v373_v49, 1 }
  0xc6   : > { %v375_v59 = vadd.f32 %v374_v51, %v373_v49  ;;  %v459_v51 = vld [vmem:[#allocation3] sm:$0x1] }
  0xc8   : > { %v390_v61 = vmul.f32 %v389_v58, %v375_v59 }
  0xca   : > { %v391_v2 = vsub.f32 %v736_v52, %v390_v61  ;;  %v392_v3 = vsub.f32 %v742_v57, %v390_v61  ;;  %v393_v5 = vsub.f32 %v738_v54, %v390_v61  ;;  %v394_v9 = vsub.f32 %v750_v63, %v390_v61 }
  0xcb   : > { %v395_v12 = vsub.f32 %v740_v55, %v390_v61  ;;  %v396_v52 = vsub.f32 %v752_v0, %v390_v61  ;;  %v397_v63 = vsub.f32 %v766_v7, %v390_v61  ;;  %v398_v55 = vsub.f32 %v778_v16, %v390_v61 }
  0xcc   : > { %v401_v11 = vmul.f32 %v706_v19, %v391_v2  ;;  %v402_v8 = vmul.f32 %v708_v21, %v392_v3  ;;  %v403_v13 = vmul.f32 %v712_v24, %v393_v5  ;;  %v404_v57 = vmul.f32 %v715_v27, %v394_v9 }
  0xcd   : > { %v405_v18 = vmul.f32 %v718_v31, %v395_v12  ;;  %v440_v21 = vsub.f32 %v390_v61, %v439_v14  ;;  %v406_v24 = vmul.f32 %v721_v35, %v396_v52  ;;  %v399_v0 = vsub.f32 %v764_v6, %v390_v61 }
  0xce   : > { %v411_v17 = vmul.f32 %v401_v11, %v401_v11  ;;  %v412_v54 = vmul.f32 %v402_v8, %v402_v8  ;;  %v413_v19 = vmul.f32 %v403_v13, %v403_v13  ;;  %v414_v23 = vmul.f32 %v404_v57, %v404_v57 }
  0xcf   : > { %v456_v26 = vmul.f32 %v455_v15, %v440_v21  ;;  %v407_v27 = vmul.f32 %v724_v39, %v397_v63  ;;  %v415_v28 = vmul.f32 %v405_v18, %v405_v18  ;;  %v400_v7 = vsub.f32 %v782_v22, %v390_v61 }
  0xd0   : > { %v421_v20 = vadd.f32 %v412_v54, %v411_v17  ;;  %v408_v31 = vmul.f32 %v727_v43, %v398_v55  ;;  %v416_v32 = vmul.f32 %v406_v24, %v406_v24  ;;  %v409_v35 = vmul.f32 %v730_v46, %v399_v0 }
  0xd1   : > { %v457_v30 = vadd.f32 %v456_v26, %v439_v14  ;;  %v417_v16 = vmul.f32 %v407_v27, %v407_v27  ;;  %v410_v36 = vmul.f32 %v733_v48, %v400_v7  ;;  %v461_v46 = vmul.f32 %v440_v21, %v440_v21 }
  0xd2   : > { %v422_v25 = vadd.f32 %v421_v20, %v413_v19  ;;  %v418_v6 = vmul.f32 %v408_v31, %v408_v31  ;;  %v419_v39 = vmul.f32 %v409_v35, %v409_v35 }
  0xd3   : > { %458 = vst [vmem:[#allocation2] sm:$0x1] %v457_v30  ;;  %v420_v40 = vmul.f32 %v410_v36, %v410_v36  ;;  %v464_v56 = vmul.f32 %v463_v50, %v461_v46 }
  0xd4   : > { %v423_v29 = vadd.f32 %v422_v25, %v414_v23 }
  0xd6   : > { %v424_v33 = vadd.f32 %v423_v29, %v415_v28 }
  0xd8   : > { %v425_v34 = vadd.f32 %v424_v33, %v416_v32 }
  0xda   : > { %v426_v37 = vadd.f32 %v425_v34, %v417_v16 }
  0xdc   : > { %v427_v38 = vadd.f32 %v426_v37, %v418_v6 }
  0xde   : > { %v428_v41 = vadd.f32 %v427_v38, %v419_v39 }
  0xe0   : > { %v429_v42 = vadd.f32 %v428_v41, %v420_v40 }
  0xe2   : > { %v430_v22 = vrot.slane %v429_v42, 4 }
  0xe4   : > { %v431_v44 = vadd.f32 %v430_v22, %v429_v42 }
  0xe6   : > { %v432_v43 = vrot.slane %v431_v44, 2 }
  0xe8   : > { %v433_v47 = vadd.f32 %v432_v43, %v431_v44 }
  0xea   : > { %v434_v49 = vrot.slane %v433_v47, 1 }
  0xec   : > { %v435_v53 = vadd.f32 %v434_v49, %v433_v47 }
  0xee   : > { %v460_v48 = vadd.f32 %v459_v51, %v435_v53  ;;  %470 = sbr.rel (%p581_p5) target bundleno = 279 (0x117), region = 44 }
  0xf0   : > { %v465_v58 = vadd.f32 %v464_v56, %v460_v48 }
  0xf2   : > { %466 = vst [vmem:[#allocation3] sm:$0x1] %v465_v58 }
  0xf3   : > { %v485_v9 = vld [vmem:[%s831_s2] sm:$0x1] }
  0xf4   : > { %v471_v11 = vld [vmem:[#allocation2] sm:$0x1] }
  0xf5   : > { %v487_v12 = vld [vmem:[%s832_s3] sm:$0x1] }
  0xf9   : > { %v472_v59 = vld [vmem:[#allocation3] sm:$0x1] }
  0xfa   : > { %v473_v60 = vmul.f32 0.00390625, %v472_v59 }
  0xfc   : > { %v474_v61 = vadd.f32 1e-05, %v473_v60 }
  0xfe   : > { %615 = vrsqrt.f32 %v474_v61  ;;  %vm481_vm4 = vweird.f32 %v474_v61 }
 0x104   : > { %v616_v62 = vpop.eup %615 }
 0x105   : > { %v476_v2 = vmul.f32 %v616_v62, %v474_v61  ;;  %vm482_vm5 = vweird.f32 %v616_v62 }
 0x106   : > { %vm483_vm6 = vmor %vm481_vm4, %vm482_vm5 }
 0x107   : > { %v477_v1 = vmul.f32 %v616_v62, %v476_v2 }
 0x109   : > { %v478_v4 = vmul.f32 0.5, %v477_v1 }
 0x10b   : > { %v479_v3 = vsub.f32 1.5, %v478_v4 }
 0x10d   : > { %v480_v5 = vmul.f32 %v616_v62, %v479_v3 }
 0x10f   : > { %v484_v10 = vsel %vm483_vm6, %v616_v62, %v480_v5 }
 0x110   : > { %v486_v8 = vmul.f32 %v485_v9, %v484_v10 }
 0x112   : > { %490 = vst [vmem:[#allocation4] sm:$0x1] %v486_v8  ;;  %v488_v13 = vmul.f32 %v486_v8, %v471_v11 }
 0x114   : > { %v489_v14 = vsub.f32 %v487_v12, %v488_v13 }
 0x116   : > { %491 = vst [vmem:[#allocation4 + $0x1] sm:$0x1] %v489_v14 }
 0x117 PF: > { %p598_p6 = scmp.eq.s32.totalorder %s691_s16, 3  ;;  %s659_s30 = smov [#allocation4]  }
 0x118   : > { %s498_s5 = sshll.u32 %s659_s30, 4  ;;  %s500_s8 = sshll.u32 %s833_s4, 4  ;;  %s499_s5 = int_to_ptr.vmem [resolvable:$true] %s498_s5  ;;  %s501_s8 = int_to_ptr.hbm [resolvable:$true] %s500_s8 }
 0x119   : > { %595 = dma.vmem_to_hbm [thread:$0]  (%p598_p6), %s499_s5, 32, %s501_s8, [#allocation5]  }
 0x11a   : > { %650 = dma.done.wait (%p598_p6), [#allocation5], 32  }
 0x11b   : > { %652 = vsyncadd (%p598_p6), [#allocation5], 4294967264 }
 0x11c PF: > { %s15_s15 = sadd.s32 1, %s655_s15  }
 0x11d   : > { %p12_p7 = scmp.ge.s32.totalorder %s15_s15, 6  }
 0x11f   :  { %14 = sbr.rel (!%p12_p7) target bundleno = 1 (0x1), region = 71 }
 0x124   :  { %514 = vsyncpa [#allocation5], 1 }
 0x125   :  { %516 = vsyncpa [#allocation5 + $0x1], 1 }

</bundles_post_ra>
